<compile_context>
chip_gen: v5e
topology: v5e:2x2
jax: 0.10.0
libtpu: 0.0.40
codegen_flags: <defaults>
</compile_context>

<pallas_src>
import jax
import jax.numpy as jnp
from jax.experimental import pallas as pl
from jax.experimental.pallas import tpu as pltpu


def _make_kernel(C, thw, hw_true, need_mask):
    nblk = thw // 128          # thw is always a multiple of 128 (>= 128)

    def _accumulate(x_ref, sum_acc, max_acc, masked, hw_id):
        ps = sum_acc[...]                                   # (C, 128) f32
        pm = max_acc[...]                                   # (C, 128) f32
        if masked:
            lane = jax.lax.broadcasted_iota(jnp.int32, (C, 128), 1)
            base = hw_id * thw
        for j in range(nblk):
            blk = x_ref[:, j * 128:(j + 1) * 128].astype(jnp.float32)
            if masked:
                valid = (base + (j * 128) + lane) < hw_true
                ps = ps + jnp.where(valid, blk, 0.0)
                pm = jnp.maximum(pm, jnp.where(valid, blk, -jnp.inf))
            else:
                ps = ps + blk
                pm = jnp.maximum(pm, blk)
        sum_acc[...] = ps
        max_acc[...] = pm

    def kernel(x_ref, w1_ref, w2_ref, o_ref, sum_acc, max_acc):
        # x_ref  : (C, thw)    current (batch, hw-tile), leading batch squeezed
        # w1_ref : (Cr, C)     fc1 (1x1 conv, no bias) weight
        # w2_ref : (C, Cr)     fc2 (1x1 conv, no bias) weight
        # o_ref  : (C, 1)      sigmoid attention column for this batch
        # sum_acc/max_acc : (C, 128) f32 wide pooling accumulators
        hw_id = pl.program_id(1)
        last = pl.num_programs(1) - 1

        @pl.when(hw_id == 0)
        def _init():
            sum_acc[...] = jnp.zeros_like(sum_acc)
            max_acc[...] = jnp.full_like(max_acc, -jnp.inf)

        if need_mask:
            @pl.when(hw_id != last)
            def _fast():
                _accumulate(x_ref, sum_acc, max_acc, False, hw_id)

            @pl.when(hw_id == last)
            def _ragged():
                _accumulate(x_ref, sum_acc, max_acc, True, hw_id)
        else:
            _accumulate(x_ref, sum_acc, max_acc, False, hw_id)

        @pl.when(hw_id == last)
        def _finalize():
            # single cross-lane reduce per batch (XLU), then the tiny MLP
            s = jnp.sum(sum_acc[...], axis=-1, keepdims=True)       # (C, 1)
            m = jnp.max(max_acc[...], axis=-1, keepdims=True)       # (C, 1)
            avg = s * jnp.float32(1.0 / hw_true)
            pooled = jnp.concatenate([avg, m], axis=1)              # (C, 2)
            w1 = w1_ref[...].astype(jnp.float32)                    # (Cr, C)
            w2 = w2_ref[...].astype(jnp.float32)                    # (C, Cr)
            h = jnp.maximum(
                jnp.dot(w1, pooled,
                        precision=jax.lax.Precision.HIGHEST,
                        preferred_element_type=jnp.float32), 0.0)   # (Cr, 2)
            o2 = jnp.dot(w2, h,
                         precision=jax.lax.Precision.HIGHEST,
                         preferred_element_type=jnp.float32)        # (C, 2)
            logits = o2[:, 0:1] + o2[:, 1:2]                        # (C, 1)
            o_ref[...] = jax.nn.sigmoid(logits).astype(o_ref.dtype)

    return kernel


def _round_down_128(v):
    return (v // 128) * 128


def channel_attention(x_nchw, w1, w2, *, block_hw=None,
                      vmem_budget_bytes=8 * 1024 * 1024):
    """ChannelAttention forward.

    x_nchw : (B, C, H, W)
    w1     : (C // ratio, C)  fc1 weight (out, in)
    w2     : (C, C // ratio)  fc2 weight (out, in)
    returns: (B, C, 1, 1) sigmoid channel attention, matching the torch module.
    """
    B, C, H, W = x_nchw.shape
    Cr = w1.shape[0]
    HW = H * W
    itemsize = jnp.dtype(x_nchw.dtype).itemsize

    x_flat = x_nchw.reshape(B, C, HW)

    if HW < 128:
        # Tiny image: pad lanes to one 128-wide tile (negligible bytes);
        # the kernel masks the padded lanes for both sum and max.
        thw = 128
        x_flat = jnp.pad(x_flat, ((0, 0), (0, 0), (0, 128 - HW)))
        hw_lanes = 128
        need_mask = True
    else:
        hw_lanes = HW
        if block_hw is None:
            budget_thw = max(
                128, _round_down_128(vmem_budget_bytes // (2 * C * itemsize)))
            thw = min(budget_thw, 8192, _round_down_128(HW))
        else:
            thw = max(128, min(_round_down_128(block_hw), _round_down_128(HW)))
        need_mask = (HW % thw) != 0

    num_hw = pl.cdiv(hw_lanes, thw)
    kernel = _make_kernel(C, thw, HW, need_mask)

    w_itemsize = jnp.dtype(w1.dtype).itemsize
    cost = pl.CostEstimate(
        flops=2 * B * C * HW + 8 * B * C * Cr,
        transcendentals=B * C,
        bytes_accessed=B * C * HW * itemsize
        + 2 * C * Cr * w_itemsize
        + B * C * itemsize,
    )

    out = pl.pallas_call(
        kernel,
        out_shape=jax.ShapeDtypeStruct((B, C, 1), x_nchw.dtype),
        grid_spec=pltpu.PrefetchScalarGridSpec(
            num_scalar_prefetch=0,
            grid=(B, num_hw),                          # HW (reduction) axis last
            in_specs=[
                pl.BlockSpec((None, C, thw), lambda b, h: (b, 0, h)),
                pl.BlockSpec((Cr, C), lambda b, h: (0, 0)),
                pl.BlockSpec((C, Cr), lambda b, h: (0, 0)),
            ],
            out_specs=pl.BlockSpec((None, C, 1), lambda b, h: (b, 0, 0)),
            scratch_shapes=[
                pltpu.VMEM((C, 128), jnp.float32),     # wide running sum
                pltpu.VMEM((C, 128), jnp.float32),     # wide running max
            ],
        ),
        compiler_params=pltpu.CompilerParams(
            dimension_semantics=("parallel", "arbitrary")),
        cost_estimate=cost,
    )(x_flat, w1, w2)

    return out.reshape(B, C, 1, 1)


def _reference(x_nchw, w1, w2):
    # pure-JAX reference mirroring the PyTorch forward
    avg = jnp.mean(x_nchw, axis=(2, 3))             # (B, C)
    mx = jnp.max(x_nchw, axis=(2, 3))               # (B, C)

    def branch(p):
        h = jnp.maximum(p @ w1.T, 0.0)              # (B, C//r)
        return h @ w2.T                             # (B, C)

    out = jax.nn.sigmoid(branch(avg) + branch(mx))
    return out.reshape(*out.shape, 1, 1)


if __name__ == "__main__":
    # shapes consistent with the module: ratio=16 -> C must be >= 16
    B, C, ratio = 2, 64, 16
    Cr = C // ratio

    key = jax.random.PRNGKey(0)
    kx, k1, k2, kx2, kx3 = jax.random.split(key, 5)
    w1 = jax.random.normal(k1, (Cr, C), dtype=jnp.float32) * 0.1   # fc1 weight
    w2 = jax.random.normal(k2, (C, Cr), dtype=jnp.float32) * 0.1   # fc2 weight

    # 1) divisible HW (16x16=256); block_hw=128 forces the multi-tile
    #    init/accumulate/finalize path (unmasked fast path only).
    x = jax.random.normal(kx, (B, C, 16, 16), dtype=jnp.float32)
    y = jax.block_until_ready(channel_attention(x, w1, w2, block_hw=128))
    assert y.shape == (B, C, 1, 1)
    assert jnp.allclose(y, _reference(x, w1, w2), atol=1e-5, rtol=1e-4), \
        "mismatch vs reference (divisible HW)"

    # 2) ragged HW (15x15=225): last tile masked in-kernel, no host padding.
    x2 = jax.random.normal(kx2, (B, C, 15, 15), dtype=jnp.float32)
    y2 = jax.block_until_ready(channel_attention(x2, w1, w2, block_hw=128))
    assert jnp.allclose(y2, _reference(x2, w1, w2), atol=1e-5, rtol=1e-4), \
        "mismatch vs reference (ragged HW)"

    # 3) tiny image (8x8=64 < 128): lane-pad + mask path.
    x3 = jax.random.normal(kx3, (B, C, 8, 8), dtype=jnp.float32)
    y3 = jax.block_until_ready(channel_attention(x3, w1, w2))
    assert jnp.allclose(y3, _reference(x3, w1, w2), atol=1e-5, rtol=1e-4), \
        "mismatch vs reference (tiny HW)"

    print("KERNEL_OK")
</pallas_src>

<mosaic_0001>
module attributes {stable_mosaic.version = 11 : i64} {
  func.func @kernel(%arg0: i32, %arg1: i32, %arg2: memref<1x64x128xf32, #tpu.memory_space<vmem>>, %arg3: memref<4x64xf32, #tpu.memory_space<vmem>>, %arg4: memref<64x4xf32, #tpu.memory_space<vmem>>, %arg5: memref<1x64x1xf32, #tpu.memory_space<vmem>>, %arg6: memref<64x128xf32, #tpu.memory_space<vmem>>, %arg7: memref<64x128xf32, #tpu.memory_space<vmem>>) attributes {dimension_semantics = [#tpu.dimension_semantics<parallel>, #tpu.dimension_semantics<arbitrary>], iteration_bounds = array<i64: 2, 2>, scalar_prefetch = 0 : i64, scratch_operands = 2 : i64, tpu.core_type = #tpu.core_type<tc>, window_params = [{transform_indices = @transform_0, window_bounds = array<i64: 1, 64, 128>}, {pipeline_mode = #tpu.pipeline_mode<synchronous>, transform_indices = @transform_1, window_bounds = array<i64: 4, 64>}, {pipeline_mode = #tpu.pipeline_mode<synchronous>, transform_indices = @transform_2, window_bounds = array<i64: 64, 4>}, {transform_indices = @transform_3, window_bounds = array<i64: 1, 64, 1>}]} {
    %c0_i32 = arith.constant 0 : i32
    %0 = arith.cmpi eq, %arg1, %c0_i32 : i32
    %1 = arith.extui %0 : i1 to i32
    %c0_i32_0 = arith.constant 0 : i32
    %2 = arith.cmpi ne, %1, %c0_i32_0 : i32
    scf.if %2 {
      %cst = arith.constant 0.000000e+00 : f32
      %14 = vector.broadcast %cst : f32 to vector<64x128xf32>
      %c0_12 = arith.constant 0 : index
      %c0_13 = arith.constant 0 : index
      %15 = vector.load %arg6[%c0_12, %c0_13] : memref<64x128xf32, #tpu.memory_space<vmem>>, vector<64x128xf32>
      tpu.vector_store %arg6[%c0_12, %c0_13], %14 {strides = array<i32>} : memref<64x128xf32, #tpu.memory_space<vmem>>, vector<64x128xf32>,
      %cst_14 = arith.constant 0xFF800000 : f32
      %16 = vector.broadcast %cst_14 : f32 to vector<64x128xf32>
      %c0_15 = arith.constant 0 : index
      %c0_16 = arith.constant 0 : index
      %17 = vector.load %arg7[%c0_15, %c0_16] : memref<64x128xf32, #tpu.memory_space<vmem>>, vector<64x128xf32>
      tpu.vector_store %arg7[%c0_15, %c0_16], %16 {strides = array<i32>} : memref<64x128xf32, #tpu.memory_space<vmem>>, vector<64x128xf32>,
    } else {
    }
    %c0 = arith.constant 0 : index
    %c0_1 = arith.constant 0 : index
    %3 = vector.load %arg6[%c0, %c0_1] : memref<64x128xf32, #tpu.memory_space<vmem>>, vector<64x128xf32>
    %c0_2 = arith.constant 0 : index
    %c0_3 = arith.constant 0 : index
    %4 = vector.load %arg7[%c0_2, %c0_3] : memref<64x128xf32, #tpu.memory_space<vmem>>, vector<64x128xf32>
    %c0_4 = arith.constant 0 : index
    %c0_5 = arith.constant 0 : index
    %c0_6 = arith.constant 0 : index
    %5 = vector.load %arg2[%c0_4, %c0_5, %c0_6] : memref<1x64x128xf32, #tpu.memory_space<vmem>>, vector<1x64x128xf32>
    %6 = vector.shape_cast %5 : vector<1x64x128xf32> to vector<64x128xf32>
    %7 = arith.addf %3, %6 : vector<64x128xf32>
    %8 = arith.maximumf %4, %6 : vector<64x128xf32>
    %c0_7 = arith.constant 0 : index
    %c0_8 = arith.constant 0 : index
    %9 = vector.load %arg6[%c0_7, %c0_8] : memref<64x128xf32, #tpu.memory_space<vmem>>, vector<64x128xf32>
    tpu.vector_store %arg6[%c0_7, %c0_8], %7 {strides = array<i32>} : memref<64x128xf32, #tpu.memory_space<vmem>>, vector<64x128xf32>,
    %c0_9 = arith.constant 0 : index
    %c0_10 = arith.constant 0 : index
    %10 = vector.load %arg7[%c0_9, %c0_10] : memref<64x128xf32, #tpu.memory_space<vmem>>, vector<64x128xf32>
    tpu.vector_store %arg7[%c0_9, %c0_10], %8 {strides = array<i32>} : memref<64x128xf32, #tpu.memory_space<vmem>>, vector<64x128xf32>,
    %c1_i32 = arith.constant 1 : i32
    %11 = arith.cmpi eq, %arg1, %c1_i32 : i32
    %12 = arith.extui %11 : i1 to i32
    %c0_i32_11 = arith.constant 0 : i32
    %13 = arith.cmpi ne, %12, %c0_i32_11 : i32
    scf.if %13 {
      %c0_12 = arith.constant 0 : index
      %c0_13 = arith.constant 0 : index
      %14 = vector.load %arg6[%c0_12, %c0_13] : memref<64x128xf32, #tpu.memory_space<vmem>>, vector<64x128xf32>
      %cst = arith.constant dense<0.000000e+00> : vector<64xf32>
      %15 = vector.multi_reduction <add>, %14, %cst [1] : vector<64x128xf32> to vector<64xf32>
      %16 = vector.shape_cast %15 : vector<64xf32> to vector<64x1xf32>
      %c0_14 = arith.constant 0 : index
      %c0_15 = arith.constant 0 : index
      %17 = vector.load %arg7[%c0_14, %c0_15] : memref<64x128xf32, #tpu.memory_space<vmem>>, vector<64x128xf32>
      %cst_16 = arith.constant dense<0xFF800000> : vector<64xf32>
      %18 = vector.multi_reduction <maximumf>, %17, %cst_16 [1] : vector<64x128xf32> to vector<64xf32>
      %19 = vector.shape_cast %18 : vector<64xf32> to vector<64x1xf32>
      %cst_17 = arith.constant 3.906250e-03 : f32
      %20 = vector.broadcast %cst_17 : f32 to vector<64x1xf32>
      %21 = arith.mulf %16, %20 : vector<64x1xf32>
      %22 = tpu.concatenate %21, %19 in 1 : vector<64x1xf32>, vector<64x1xf32> -> vector<64x2xf32>
      %c0_18 = arith.constant 0 : index
      %c0_19 = arith.constant 0 : index
      %23 = vector.load %arg3[%c0_18, %c0_19] : memref<4x64xf32, #tpu.memory_space<vmem>>, vector<4x64xf32>
      %c0_20 = arith.constant 0 : index
      %c0_21 = arith.constant 0 : index
      %24 = vector.load %arg4[%c0_20, %c0_21] : memref<64x4xf32, #tpu.memory_space<vmem>>, vector<64x4xf32>
      %cst_22 = arith.constant dense<0.000000e+00> : vector<4x2xf32>
      %25 = tpu.matmul %23, %22, %cst_22 {dimension_numbers = #tpu.dot_dimension_numbers<[1], [0], [0], [1], [0, 0, 1, 1], [], []>, precision = #tpu.contract_precision<fp32>} : vector<4x64xf32>, vector<64x2xf32>, vector<4x2xf32> -> vector<4x2xf32>
      %cst_23 = arith.constant 0.000000e+00 : f32
      %26 = vector.broadcast %cst_23 : f32 to vector<4x2xf32>
      %27 = arith.maximumf %25, %26 : vector<4x2xf32>
      %cst_24 = arith.constant dense<0.000000e+00> : vector<64x2xf32>
      %28 = tpu.matmul %24, %27, %cst_24 {dimension_numbers = #tpu.dot_dimension_numbers<[1], [0], [0], [1], [0, 0, 1, 1], [], []>, precision = #tpu.contract_precision<fp32>} : vector<64x4xf32>, vector<4x2xf32>, vector<64x2xf32> -> vector<64x2xf32>
      %29 = vector.extract_strided_slice %28 {offsets = [0, 0], sizes = [64, 1], strides = [1, 1]} : vector<64x2xf32> to vector<64x1xf32>
      %30 = vector.extract_strided_slice %28 {offsets = [0, 1], sizes = [64, 1], strides = [1, 1]} : vector<64x2xf32> to vector<64x1xf32>
      %31 = arith.addf %29, %30 : vector<64x1xf32>
      %32 = arith.negf %31 : vector<64x1xf32>
      %33 = math.exp %32 : vector<64x1xf32>
      %cst_25 = arith.constant 1.000000e+00 : f32
      %34 = vector.broadcast %cst_25 : f32 to vector<64x1xf32>
      %35 = arith.addf %34, %33 : vector<64x1xf32>
      %36 = arith.divf %34, %35 : vector<64x1xf32>
      %c0_26 = arith.constant 0 : index
      %c0_27 = arith.constant 0 : index
      %c0_28 = arith.constant 0 : index
      %37 = vector.load %arg5[%c0_26, %c0_27, %c0_28] : memref<1x64x1xf32, #tpu.memory_space<vmem>>, vector<1x64x1xf32>
      %38 = vector.shape_cast %37 : vector<1x64x1xf32> to vector<64x1xf32>
      %39 = vector.shape_cast %36 : vector<64x1xf32> to vector<1x64x1xf32>
      tpu.vector_store %arg5[%c0_26, %c0_27, %c0_28], %39 {strides = array<i32>} : memref<1x64x1xf32, #tpu.memory_space<vmem>>, vector<1x64x1xf32>,
    } else {
    }
    return
  }
  func.func @transform_0(%arg0: i32, %arg1: i32) -> (i32, i32, i32) {
    %c0_i32 = arith.constant 0 : i32
    %c0_i32_0 = arith.constant 0 : i32
    return %arg0, %c0_i32, %arg1 : i32, i32, i32
  }
  func.func @transform_1(%arg0: i32, %arg1: i32) -> (i32, i32) {
    %c0_i32 = arith.constant 0 : i32
    %c0_i32_0 = arith.constant 0 : i32
    %c0_i32_1 = arith.constant 0 : i32
    return %c0_i32, %c0_i32_0 : i32, i32
  }
  func.func @transform_2(%arg0: i32, %arg1: i32) -> (i32, i32) {
    %c0_i32 = arith.constant 0 : i32
    %c0_i32_0 = arith.constant 0 : i32
    %c0_i32_1 = arith.constant 0 : i32
    return %c0_i32, %c0_i32_0 : i32, i32
  }
  func.func @transform_3(%arg0: i32, %arg1: i32) -> (i32, i32, i32) {
    %c0_i32 = arith.constant 0 : i32
    %c0_i32_0 = arith.constant 0 : i32
    %c0_i32_1 = arith.constant 0 : i32
    return %arg0, %c0_i32, %c0_i32_0 : i32, i32, i32
  }
}

</mosaic_0001>

<bundles_post_ra>
// kernel: tpu_custom_call.1
= control target key start
LH: loop header
LB: loop body
LE: loop exit
PB: predicated region body
PF: predicated region fallthrough
CT: control target
= control target key end

     0   :  { %8 = vsyncpa [#allocation5], 0  ;;  %s1913_s0 = inlined_call_operand.hbm [shape: f32[2,64,256], index: 0, kind: input, shape index: {}]   ;;  %s1914_s1 = inlined_call_operand.vmem [shape: f32[4,64], index: 1, kind: input, shape index: {}]   ;;  %s1915_s2 = inlined_call_operand.vmem [shape: f32[64,4], index: 2, kind: input, shape index: {}]   ;;  %s1916_s3 = inlined_call_operand.vmem [shape: f32[2,64,1], index: 3, kind: output, shape index: {}]  }
   0x1   :  { %10 = vsyncpa [#allocation5 + $0x1], 0  ;;  %s1535_s12 = smov 0   ;;  %s1537_s13 = smov 0  }
   0x2   :  { %s1539_s14 = smov 0   ;;  %s1541_s15 = smov 0  }
   0x3   :  { %s1543_s16 = smov 0   ;;  %s1545_s17 = smov 0  }
   0x4   :  { %s1547_s18 = smov 0   ;;  %s1549_s19 = smov 0  }
   0x5 LB: > { %s1276_s20 = sadd.s32 4294967295, %s1507_s19   ;;  %s25_s21 = sadd.s32 1, %s1499_s17  ;;  %s1507_s19 = sphi %s1549_s19, %s16_s19   ;;  %s1503_s18 = sphi %s1547_s18, %s1925_s18   ;;  %s1499_s17 = sphi %s1545_s17, %s1924_s17   ;;  %s1495_s16 = sphi %s1543_s16, %s1923_s16   ;;  %s1491_s15 = sphi %s1541_s15, %s1922_s15   ;;  %s1487_s14 = sphi %s1539_s14, %s1921_s14   ;;  %s1483_s13 = sphi %s1537_s13, %s1920_s13   ;;  %s1479_s12 = sphi %s1535_s12, %s1919_s12  }
   0x6   : > { %p26_p0 = scmp.ge.s32.totalorder %s25_s21, 2  ;;  %s28_s22 = sadd.s32 1, %s1503_s18 }
   0x7   : > { %s37_s23 = sadd.s32 1, %s1487_s14  ;;  %p44_p1 = scmp.ne.s32.totalorder %s1487_s14, %s1483_s13 }
   0x8   : > { %s1927_s21 = smov (%p26_p0, %s25_s21), 0  ;;  %s1929_s22 = smov (!%p26_p0, %s28_s22), %s1503_s18 }
   0x9   : > { %s33_s24 = ssub.s32 %s1499_s17, %s1927_s21  ;;  %p45_p2 = scmp.eq.s32.totalorder %s1507_s19, 0 }
   0xa   : > { %p30_p3 = scmp.ge.s32.totalorder %s1929_s22, 2  ;;  %p50_p4 = scmp.ne.s32.totalorder %s1483_s13, %s1479_s12 }
   0xb   : > { %p1586_p5 = por %p45_p2, %p44_p1  ;;  %p51_p6 = scmp.eq.s32.totalorder %s1276_s20, 0 }
   0xc   : > { %s1931_s22 = smov (%p30_p3, %s1929_s22), 0  ;;  %p1308_p8 = scmp.lt.s32.totalorder %s1507_s19, 4 }
   0xd   : > { %p1592_p7 = por %p51_p6, %p50_p4  ;;  %s32_s27 = ssub.s32 %s1503_s18, %s1931_s22 }
   0xe   : > { %s34_s28 = sor.u32 %s33_s24, %s32_s27  ;;  %s148_s29 = sand.u32 1, %s1487_s14  }
   0xf   : > { %p35_p9 = scmp.eq.s32.totalorder %s34_s28, 0  ;;  %s1280_s30 = sshll.u32 %s148_s29, 6 }
  0x10   : > { %s1281_s4 = sshll.u32 %s1503_s18, 4  ;;  %s152_s8 = scalar_lea.vmem [#allocation4], %s1280_s30 }
  0x11   : > { %s1602_s5 = scalar_select %p35_p9, %s1487_s14, %s37_s23  }
  0x12   : > { %s156_s6 = sadd.s32 %s1499_s17, %s1281_s4  ;;  %s161_s9 = sshll.u32 %s152_s8, 4  ;;  %s162_s9 = int_to_ptr.vmem [resolvable:$true] %s161_s9 }
  0x13   : > { %s1282_s7 = sshll.u32 %s156_s6, 3  ;;  %p1305_p10 = pnand %p1308_p8, %p1586_p5 }
  0x14   : > { %s158_s12 = scalar_lea.hbm %s1913_s0, %s1282_s7  ;;  %p1283_p11 = scmp.ge.s32.totalorder %s1507_s19, 1 }
  0x15   : > { %s159_s20 = sshll.u32 %s158_s12, 4  ;;  %s149_s24 = scalar_lea.sflag [#allocation5], %s148_s29  ;;  %s160_s20 = int_to_ptr.hbm [resolvable:$true] %s159_s20 }
  0x16   : > { %s1509_s27 = smov 256   ;;  %s1510_s23 = smov 128  }
  0x17   : > { %s1511_s28 = smov 8   ;;  %p169_p12 = scmp.lt.s32.totalorder %s1507_s19, 5 }
  0x18   : > { %1307 = dma.hbm_to_vmem [thread:$0]  (!%p1305_p10), %s160_s20, 1024, %s162_s9, %s149_s24, %s1509_s27, %s1510_s23, %s1511_s28  }
  0x19   : > { %p170_p13 = pnand %p1283_p11, %p169_p12 }
  0x1a   : > { %s175_s30 = sand.u32 (!%p170_p13), 1, %s1483_s13  }
  0x1b   : > { %173 = sbr.rel (%p170_p13) target bundleno = 780 (0x30c), region = 32  ;;  %s1284_s4 = sshll.u32 (!%p170_p13), %s175_s30, 6 }
  0x1c   : > { %s176_s6 = scalar_lea.sflag (!%p170_p13), [#allocation5], %s175_s30  ;;  %s1615_s7 = scalar_lea.vmem (!%p170_p13), [#allocation4], %s1284_s4 }
  0x20   : > { %1474 = dma.done.wait (%p1592_p7), %s176_s6, 1024  }
  0x21   : > { %1476 = vsyncadd (%p1592_p7), %s176_s6, 4294966272  ;;  %p203_p0 = scmp.lt.s32.totalorder %s1495_s16, 1  ;;  %p1287_p1 = scmp.ne.s32.totalorder %s1491_s15, 0 }
  0x23   : > { %s1933_s16 = smov (!%p203_p0, %s1495_s16), 1  ;;  %211 = sbr.rel (%p1287_p1) target bundleno = 57 (0x39), region = 40 }
  0x24   : > { %s1299_s25 = sshll.u32 %s1933_s16, 6 }
  0x25   : > { %s1626_s9 = scalar_lea.vmem %s1916_s3, %s1299_s25 }
  0x28   : > { %v1512_v0 = vmov 0.0   ;;  %v1513_v1 = vmov -inf  }
  0x29   : > { %212 = vst [vmem:[#allocation2 + $0x30] sm:$0xff] %v1512_v0 }
  0x2a   : > { %213 = vst [vmem:[#allocation2] sm:$0xff] %v1512_v0 }
  0x2b   : > { %214 = vst [vmem:[#allocation2 + $0x18] sm:$0xff] %v1512_v0 }
  0x2c   : > { %215 = vst [vmem:[#allocation2 + $0x10] sm:$0xff] %v1512_v0 }
  0x2d   : > { %216 = vst [vmem:[#allocation2 + $0x8] sm:$0xff] %v1512_v0 }
  0x2e   : > { %217 = vst [vmem:[#allocation2 + $0x20] sm:$0xff] %v1512_v0 }
  0x2f   : > { %218 = vst [vmem:[#allocation2 + $0x28] sm:$0xff] %v1512_v0 }
  0x30   : > { %219 = vst [vmem:[#allocation2 + $0x38] sm:$0xff] %v1512_v0 }
  0x31   : > { %220 = vst [vmem:[#allocation3] sm:$0xff] %v1513_v1 }
  0x32   : > { %221 = vst [vmem:[#allocation3 + $0x18] sm:$0xff] %v1513_v1 }
  0x33   : > { %222 = vst [vmem:[#allocation3 + $0x10] sm:$0xff] %v1513_v1 }
  0x34   : > { %223 = vst [vmem:[#allocation3 + $0x20] sm:$0xff] %v1513_v1 }
  0x35   : > { %224 = vst [vmem:[#allocation3 + $0x28] sm:$0xff] %v1513_v1 }
  0x36   : > { %225 = vst [vmem:[#allocation3 + $0x8] sm:$0xff] %v1513_v1 }
  0x37   : > { %226 = vst [vmem:[#allocation3 + $0x30] sm:$0xff] %v1513_v1 }
  0x38   : > { %227 = vst [vmem:[#allocation3 + $0x38] sm:$0xff] %v1513_v1 }
  0x39 PF: > { %v228_v2 = vld [vmem:[#allocation2 + $0x30] sm:$0xff]  ;;  %v244_v3 = vld [vmem:[%s1615_s7] sm:$0xff]  ;;  %v245_v6 = vld [vmem:[%s1615_s7 + $0x8] sm:$0xff]  ;;  %p1288_p2 = scmp.ne.s32.totalorder %s1491_s15, 1 }
  0x3a   : > { %v229_v4 = vld [vmem:[#allocation2] sm:$0xff]  ;;  %v252_v5 = vadd.f32 %v244_v3, %v228_v2  ;;  %v230_v7 = vld [vmem:[#allocation2 + $0x18] sm:$0xff]  ;;  %v246_v8 = vld [vmem:[%s1615_s7 + $0x10] sm:$0xff]  ;;  %s1514_s15 = smov (!%p1288_p2), 127  }
  0x3b   : > { %v253_v9 = vadd.f32 %v245_v6, %v229_v4  ;;  %v254_v10 = vadd.f32 %v246_v8, %v230_v7  ;;  %v231_v11 = vld [vmem:[#allocation2 + $0x10] sm:$0xff]  ;;  %v247_v12 = vld [vmem:[%s1615_s7 + $0x18] sm:$0xff]  ;;  %v232_v13 = vld [vmem:[#allocation2 + $0x8] sm:$0xff] }
  0x3c   : > { %268 = vst [vmem:[#allocation2 + $0x30] sm:$0xff] %v252_v5  ;;  %v255_v14 = vadd.f32 %v247_v12, %v231_v11  ;;  %v248_v15 = vld [vmem:[%s1615_s7 + $0x20] sm:$0xff]  ;;  %v249_v17 = vld [vmem:[%s1615_s7 + $0x28] sm:$0xff]  ;;  %v250_v21 = vld [vmem:[%s1615_s7 + $0x30] sm:$0xff] }
  0x3d   : > { %v233_v16 = vld [vmem:[#allocation2 + $0x20] sm:$0xff]  ;;  %269 = vst [vmem:[#allocation2] sm:$0xff] %v253_v9  ;;  %v256_v18 = vadd.f32 %v248_v15, %v232_v13  ;;  %v234_v20 = vld [vmem:[#allocation2 + $0x28] sm:$0xff]  ;;  %v235_v22 = vld [vmem:[#allocation2 + $0x38] sm:$0xff] }
  0x3e   : > { %v257_v19 = vadd.f32 %v249_v17, %v233_v16  ;;  %270 = vst [vmem:[#allocation2 + $0x18] sm:$0xff] %v254_v10  ;;  %v258_v23 = vadd.f32 %v250_v21, %v234_v20  ;;  %v251_v24 = vld [vmem:[%s1615_s7 + $0x38] sm:$0xff]  ;;  %v236_v25 = vld [vmem:[#allocation3] sm:$0xff]  ;;  %v238_v28 = vld [vmem:[#allocation3 + $0x10] sm:$0xff] }
  0x3f   : > { %v237_v26 = vld [vmem:[#allocation3 + $0x18] sm:$0xff]  ;;  %271 = vst [vmem:[#allocation2 + $0x10] sm:$0xff] %v255_v14  ;;  %v259_v27 = vadd.f32 %v251_v24, %v235_v22  ;;  %v260_v29 = vmax.f32 %v236_v25, %v244_v3  ;;  %v239_v30 = vld [vmem:[#allocation3 + $0x20] sm:$0xff]  ;;  %v240_v32 = vld [vmem:[#allocation3 + $0x28] sm:$0xff]  ;;  %v262_v33 = vmax.f32 %v238_v28, %v246_v8 }
  0x40   : > { %272 = vst [vmem:[#allocation2 + $0x8] sm:$0xff] %v256_v18  ;;  %v261_v31 = vmax.f32 %v237_v26, %v245_v6  ;;  %v241_v34 = vld [vmem:[#allocation3 + $0x8] sm:$0xff]  ;;  %v263_v35 = vmax.f32 %v239_v30, %v247_v12  ;;  %v242_v36 = vld [vmem:[#allocation3 + $0x30] sm:$0xff]  ;;  %v264_v37 = vmax.f32 %v240_v32, %v248_v15  ;;  %v243_v38 = vld [vmem:[#allocation3 + $0x38] sm:$0xff] }
  0x41   : > { %273 = vst [vmem:[#allocation2 + $0x20] sm:$0xff] %v257_v19  ;;  %v265_v39 = vmax.f32 %v241_v34, %v249_v17  ;;  %v266_v40 = vmax.f32 %v242_v36, %v250_v21  ;;  %v267_v41 = vmax.f32 %v243_v38, %v251_v24 }
  0x42   : > { %274 = vst [vmem:[#allocation2 + $0x28] sm:$0xff] %v258_v23 }
  0x43   : > { %275 = vst [vmem:[#allocation2 + $0x38] sm:$0xff] %v259_v27 }
  0x44   : > { %276 = vst [vmem:[#allocation3] sm:$0xff] %v260_v29 }
  0x45   : > { %277 = vst [vmem:[#allocation3 + $0x18] sm:$0xff] %v261_v31 }
  0x46   : > { %278 = vst [vmem:[#allocation3 + $0x10] sm:$0xff] %v262_v33 }
  0x47   : > { %279 = vst [vmem:[#allocation3 + $0x20] sm:$0xff] %v263_v35  ;;  %287 = sbr.rel (%p1288_p2) target bundleno = 780 (0x30c), region = 44 }
  0x48   : > { %280 = vst [vmem:[#allocation3 + $0x28] sm:$0xff] %v264_v37 }
  0x49   : > { %281 = vst [vmem:[#allocation3 + $0x8] sm:$0xff] %v265_v39 }
  0x4a   : > { %282 = vst [vmem:[#allocation3 + $0x30] sm:$0xff] %v266_v40 }
  0x4b   : > { %283 = vst [vmem:[#allocation3 + $0x38] sm:$0xff] %v267_v41 }
  0x4c   : > { %v295_v44 = vld [vmem:[#allocation2 + $0x38] sm:$0xff]  ;;  %v293_v45 = vld [vmem:[#allocation2 + $0x20] sm:$0xff]  ;;  %v292_v46 = vld [vmem:[#allocation2 + $0x8] sm:$0xff]  ;;  %vm344_vm0 = vcmask 7168   ;;  %vm362_vm1 = vcmask 523264   ;;  %vm604_vm2 = vcmask 31744  }
  0x4d   : > { %310 = vadd.xlane.f32.xlu0 %v295_v44  ;;  %v294_v47 = vld [vmem:[#allocation2 + $0x28] sm:$0xff]  ;;  %v291_v49 = vld [vmem:[#allocation2 + $0x10] sm:$0xff]  ;;  %v289_v52 = vld [vmem:[#allocation2] sm:$0xff]  ;;  %vm629_vm3 = vcmask 1043456  }
  0x4e   : > { %v315_v51 = vld [vmem:[#allocation3 + $0x20] sm:$0xff]  ;;  %v290_v53 = vld [vmem:[#allocation2 + $0x18] sm:$0xff]  ;;  %v288_v55 = vld [vmem:[#allocation2 + $0x30] sm:$0xff] }
  0x4f   : > { %v316_v48 = vld [vmem:[#allocation3 + $0x28] sm:$0xff]  ;;  %v313_v54 = vld [vmem:[#allocation3 + $0x18] sm:$0xff]  ;;  %v314_v56 = vld [vmem:[#allocation3 + $0x10] sm:$0xff] }
  0x50   : > { %v317_v50 = vld [vmem:[#allocation3 + $0x8] sm:$0xff]  ;;  %v312_v57 = vld [vmem:[#allocation3] sm:$0xff] }
  0x51   : > { %v318_v43 = vld [vmem:[#allocation3 + $0x30] sm:$0xff]  ;;  %v353_v28 = vld [vmem:[%s1914_s1] sm:$0xf] }
  0x52   : > { %v319_v42 = vld [vmem:[#allocation3 + $0x38] sm:$0xff]  ;;  %332 = vmax.xlane.f32.xlu2 %v318_v43  ;;  %v364_v36 = vsel %vm362_vm1, %v353_v28, 0 }
  0x53   : > { %334 = vmax.xlane.f32.xlu1 %v319_v42  ;;  %v1699_v41 = vand.u32 4294901760, %v364_v36 }
  0x55   : > { %308 = vadd.xlane.f32.xlu0 %v294_v47 }
  0x5a   : > { %304 = vadd.xlane.f32.xlu2 %v292_v46 }
  0x5b   : > { %306 = vadd.xlane.f32.xlu1 %v293_v45 }
  0x5d   : > { %330 = vmax.xlane.f32.xlu0 %v317_v50 }
  0x62   : > { %328 = vmax.xlane.f32.xlu2 %v316_v48  ;;  %v391_v48 = vsub.f32 %v364_v36, %v1699_v41 }
  0x63   : > { %302 = vadd.xlane.f32.xlu1 %v291_v49 }
  0x65   : > { %300 = vadd.xlane.f32.xlu0 %v290_v53 }
  0x6a   : > { %298 = vadd.xlane.f32.xlu2 %v289_v52 }
  0x6b   : > { %326 = vmax.xlane.f32.xlu1 %v315_v51 }
  0x6d   : > { %324 = vmax.xlane.f32.xlu0 %v314_v56  ;;  %v392_v56 = vand.u32 4294901760, %v391_v48 }
  0x72   : > { %322 = vmax.xlane.f32.xlu2 %v313_v54 }
  0x73   : > { %296 = vadd.xlane.f32.xlu1 %v288_v55 }
  0x75   : > { %320 = vmax.xlane.f32.xlu0 %v312_v57 }
  0xc0   : > { %v311_v60 = vpop.xlane.xlu0 %310 }
  0xc1   : > { %v343_v61 = vmul.f32 0.00390625, %v311_v60 }
  0xc5   : > { %v333_v59 = vpop.xlane.xlu2 %332 }
  0xc6   : > { %v335_v58 = vpop.xlane.xlu1 %334 }
  0xc7   : > { %v352_v62 = vsel %vm344_vm0, %v343_v61, %v335_v58 }
  0xc8   : > { %v1639_v63 = vand.u32 4294901760, %v352_v62  ;;  %v309_v3 = vpop.xlane.xlu0 %308 }
  0xc9   : > { %v342_v5 = vmul.f32 0.00390625, %v309_v3 }
  0xca   : > { %375 = vmatpush.msra.mxu0 %v1639_v63  ;;  %507 = vmatpush.msra.mxu3 %v1639_v63  ;;  %v1644_v0 = vsub.f32 %v352_v62, %v1639_v63 }
  0xcb   : > { %v351_v7 = vsel %vm344_vm0, %v342_v5, %v333_v59 }
  0xcc   : > { %470 = vmatpush.msra.mxu2 %v1644_v0  ;;  %v409_v4 = vand.u32 4294901760, %v1644_v0  ;;  %v1652_v8 = vand.u32 4294901760, %v351_v7 }
  0xcd   : > { %v305_v2 = vpop.xlane.xlu2 %304 }
  0xce   : > { %v307_v1 = vpop.xlane.xlu1 %306  ;;  %v410_v6 = vsub.f32 %v1644_v0, %v409_v4  ;;  %v340_v9 = vmul.f32 0.00390625, %v305_v2  ;;  %377 = vmatpush.msra.mxu0 %v1652_v8  ;;  %v1656_v12 = vsub.f32 %v351_v7, %v1652_v8  ;;  %509 = vmatpush.msra.mxu3 %v1652_v8  ;;  %v357_v0 = vld [vmem:[%s1915_s2 + $0x18] sm:$0xff] }
  0xcf   : > { %v341_v11 = vmul.f32 0.00390625, %v307_v1  ;;  %v393_v1 = vsub.f32 %v391_v48, %v392_v56 }
  0xd0   : > { %v411_v10 = vand.u32 4294901760, %v410_v6  ;;  %473 = vmatpush.msra.mxu2 %v1656_v12  ;;  %v331_v15 = vpop.xlane.xlu0 %330  ;;  %v415_v17 = vand.u32 4294901760, %v1656_v12 }
  0xd1   : > { %v350_v18 = vsel %vm344_vm0, %v341_v11, %v331_v15 }
  0xd2   : > { %412 = vmatpush.msra.mxu1 %v411_v10  ;;  %v1665_v20 = vand.u32 4294901760, %v350_v18  ;;  %v416_v21 = vsub.f32 %v1656_v12, %v415_v17 }
  0xd4   : > { %v1674_v23 = vsub.f32 %v350_v18, %v1665_v20  ;;  %379 = vmatpush.msra.mxu0 %v1665_v20  ;;  %511 = vmatpush.msra.mxu3 %v1665_v20  ;;  %v417_v25 = vand.u32 4294901760, %v416_v21  ;;  %v358_v21 = vld [vmem:[%s1915_s2 + $0x20] sm:$0xff] }
  0xd5   : > { %v329_v13 = vpop.xlane.xlu2 %328 }
  0xd6   : > { %v303_v14 = vpop.xlane.xlu1 %302  ;;  %v349_v16 = vsel %vm344_vm0, %v340_v9, %v329_v13  ;;  %418 = vmatpush.msra.mxu1 %v417_v25  ;;  %v421_v27 = vand.u32 4294901760, %v1674_v23  ;;  %476 = vmatpush.msra.mxu2 %v1674_v23  ;;  %v394_v9 = vand.u32 4294901760, %v393_v1 }
  0xd7   : > { %v1663_v19 = vand.u32 4294901760, %v349_v16  ;;  %v339_v24 = vmul.f32 0.00390625, %v303_v14 }
  0xd8   : > { %v301_v32 = vpop.xlane.xlu0 %300  ;;  %v422_v33 = vsub.f32 %v1674_v23, %v421_v27 }
  0xd9   : > { %v1671_v22 = vsub.f32 %v349_v16, %v1663_v19  ;;  %381 = vmatpush.msra.mxu0 %v1663_v19  ;;  %513 = vmatpush.msra.mxu3 %v1663_v19  ;;  %v338_v43 = vmul.f32 0.00390625, %v301_v32 }
  0xda   : > { %v423_v37 = vand.u32 4294901760, %v422_v33 }
  0xdb   : > { %v427_v26 = vand.u32 4294901760, %v1671_v22  ;;  %479 = vmatpush.msra.mxu2 %v1671_v22 }
  0xdc   : > { %424 = vmatpush.msra.mxu1 %v423_v37 }
  0xdd   : > { %v299_v30 = vpop.xlane.xlu2 %298  ;;  %v428_v34 = vsub.f32 %v1671_v22, %v427_v26 }
  0xde   : > { %v327_v29 = vpop.xlane.xlu1 %326  ;;  %v337_v39 = vmul.f32 0.00390625, %v299_v30 }
  0xdf   : > { %v348_v31 = vsel %vm344_vm0, %v339_v24, %v327_v29  ;;  %v429_v40 = vand.u32 4294901760, %v428_v34  ;;  %v356_v34 = vld [vmem:[%s1915_s2 + $0x10] sm:$0xff] }
  0xe0   : > { %v1694_v35 = vand.u32 4294901760, %v348_v31  ;;  %v325_v46 = vpop.xlane.xlu0 %324 }
  0xe1   : > { %430 = vmatpush.msra.mxu1 %v429_v40  ;;  %v347_v49 = vsel %vm344_vm0, %v338_v43, %v325_v46 }
  0xe2   : > { %v432_v38 = vsub.f32 %v348_v31, %v1694_v35  ;;  %383 = vmatpush.msra.mxu0 %v1694_v35  ;;  %515 = vmatpush.msra.mxu3 %v1694_v35  ;;  %v384_v52 = vand.u32 4294901760, %v347_v49 }
  0xe4   : > { %482 = vmatpush.msra.mxu2 %v432_v38  ;;  %v433_v42 = vand.u32 4294901760, %v432_v38  ;;  %v438_v55 = vsub.f32 %v347_v49, %v384_v52  ;;  %385 = vmatpush.msra.mxu0 %v384_v52 }
  0xe5   : > { %v323_v44 = vpop.xlane.xlu2 %322  ;;  %517 = vmatpush.msra.mxu3 %v384_v52 }
  0xe6   : > { %v434_v45 = vsub.f32 %v432_v38, %v433_v42  ;;  %v346_v47 = vsel %vm344_vm0, %v337_v39, %v323_v44  ;;  %v297_v53 = vpop.xlane.xlu1 %296  ;;  %485 = vmatpush.msra.mxu2 %v438_v55  ;;  %v439_v59 = vand.u32 4294901760, %v438_v55 }
  0xe7   : > { %v386_v50 = vand.u32 4294901760, %v346_v47  ;;  %v336_v57 = vmul.f32 0.00390625, %v297_v53  ;;  %v360_v53 = vld [vmem:[%s1915_s2 + $0x30] sm:$0xff] }
  0xe8   : > { %v435_v51 = vand.u32 4294901760, %v434_v45  ;;  %v321_v60 = vpop.xlane.xlu0 %320  ;;  %v440_v61 = vsub.f32 %v438_v55, %v439_v59 }
  0xe9   : > { %v444_v54 = vsub.f32 %v346_v47, %v386_v50  ;;  %387 = vmatpush.msra.mxu0 %v386_v50  ;;  %519 = vmatpush.msra.mxu3 %v386_v50  ;;  %v345_v2 = vsel %vm344_vm0, %v336_v57, %v321_v60  ;;  %v624_v60 = vsel %vm604_vm2, %v360_v53, 0 }
  0xea   : > { %436 = vmatpush.msra.mxu1 %v435_v51  ;;  %v388_v3 = vand.u32 4294901760, %v345_v2  ;;  %v441_v5 = vand.u32 4294901760, %v440_v61 }
  0xeb   : > { %v445_v58 = vand.u32 4294901760, %v444_v54  ;;  %488 = vmatpush.msra.mxu2 %v444_v54 }
  0xec   : > { %v450_v6 = vsub.f32 %v345_v2, %v388_v3  ;;  %389 = vmatpush.msra.mxu0 %v388_v3  ;;  %442 = vmatpush.msra.mxu1 %v441_v5  ;;  %v1794_v5 = vand.u32 4294901760, %v624_v60 }
  0xed   : > { %v446_v62 = vsub.f32 %v444_v54, %v445_v58  ;;  %521 = vmatpush.msra.mxu3 %v388_v3  ;;  %395 = vmatmul.f32.vlgmr.msra.gmra.mxu0 %v394_v9 }
  0xee   : > { %540 = vmatpush.msrb.mxu0 %v409_v4  ;;  %491 = vmatpush.msra.mxu2 %v450_v6  ;;  %v451_v10 = vand.u32 4294901760, %v450_v6 }
  0xef   : > { %v447_v7 = vand.u32 4294901760, %v446_v62  ;;  %494 = vmatmul.f32.vlgmr.msra.gmra.mxu2 %v391_v48  ;;  %525 = vmatmul.f32.vlgmr.msra.gmra.mxu3 %v392_v56 }
  0xf0   : > { %544 = vmatpush.msrb.mxu0 %v415_v17  ;;  %v452_v11 = vsub.f32 %v450_v6, %v451_v10 }
  0xf1   : > { %448 = vmatpush.msra.mxu1 %v447_v7  ;;  %v361_v7 = vld [vmem:[%s1915_s2 + $0x38] sm:$0xff] }
  0xf2   : > { %548 = vmatpush.msrb.mxu0 %v421_v27  ;;  %v453_v13 = vand.u32 4294901760, %v452_v11  ;;  %v699_v11 = vsub.f32 %v624_v60, %v1794_v5 }
  0xf4   : > { %552 = vmatpush.msrb.mxu0 %v427_v26  ;;  %454 = vmatpush.msra.mxu1 %v453_v13  ;;  %v618_v26 = vsel %vm604_vm2, %v358_v21, 0  ;;  %v627_v13 = vsel %vm604_vm2, %v361_v7, 0 }
  0xf5   : > { %456 = vmatmul.f32.vlgmr.msra.gmra.mxu1 %v1699_v41  ;;  %v1751_v32 = vand.u32 4294901760, %v618_v26 }
  0xf6   : > { %556 = vmatpush.msrb.mxu0 %v433_v42  ;;  %583 = vmatpush.msrb.mxu1 %v1639_v63  ;;  %v354_v63 = vld [vmem:[%s1915_s2] sm:$0xff]  ;;  %v612_v42 = vsel %vm604_vm2, %v356_v34, 0 }
  0xf7   : > { %v606_v4 = vsel %vm604_vm2, %v354_v63, 0 }
  0xf8   : > { %560 = vmatpush.msrb.mxu0 %v439_v59  ;;  %585 = vmatpush.msrb.mxu1 %v1652_v8  ;;  %v615_v8 = vsel %vm604_vm2, %v357_v0, 0  ;;  %v1729_v17 = vand.u32 4294901760, %v606_v4 }
  0xf9   : > { %v1731_v18 = vand.u32 4294901760, %v615_v8 }
  0xfa   : > { %564 = vmatpush.msrb.mxu0 %v445_v58  ;;  %587 = vmatpush.msrb.mxu1 %v1665_v20  ;;  %v1740_v23 = vsub.f32 %v606_v4, %v1729_v17  ;;  %v700_v4 = vand.u32 4294901760, %v699_v11 }
  0xfb   : > { %v1743_v24 = vsub.f32 %v615_v8, %v1731_v18  ;;  %v706_v8 = vand.u32 4294901760, %v627_v13 }
  0xfc   : > { %568 = vmatpush.msrb.mxu0 %v451_v10  ;;  %589 = vmatpush.msrb.mxu1 %v1663_v19  ;;  %v355_v19 = vld [vmem:[%s1915_s2 + $0x8] sm:$0xff]  ;;  %v652_v29 = vand.u32 4294901760, %v1740_v23 }
  0xfd   : > { %570 = vmatmul.f32.vlgmr.msrb.gmra.mxu0 %v1699_v41  ;;  %v609_v25 = vsel %vm604_vm2, %v355_v19, 0  ;;  %v676_v30 = vand.u32 4294901760, %v1743_v24 }
  0xfe   : > { %591 = vmatpush.msrb.mxu1 %v1694_v35  ;;  %v1749_v31 = vand.u32 4294901760, %v609_v25  ;;  %v359_v35 = vld [vmem:[%s1915_s2 + $0x28] sm:$0xff]  ;;  %v653_v37 = vsub.f32 %v1740_v23, %v652_v29 }
  0xff   : > { %v677_v38 = vsub.f32 %v1743_v24, %v676_v30  ;;  %v621_v43 = vsel %vm604_vm2, %v359_v35, 0 }
 0x100   : > { %593 = vmatpush.msrb.mxu1 %v384_v52  ;;  %v1766_v39 = vsub.f32 %v609_v25, %v1749_v31  ;;  %v654_v45 = vand.u32 4294901760, %v653_v37  ;;  %v1777_v51 = vand.u32 4294901760, %v621_v43 }
 0x101   : > { %v678_v46 = vand.u32 4294901760, %v677_v38 }
 0x102   : > { %595 = vmatpush.msrb.mxu1 %v386_v50  ;;  %v660_v47 = vand.u32 4294901760, %v1766_v39  ;;  %v1775_v50 = vand.u32 4294901760, %v612_v42  ;;  %v1790_v58 = vsub.f32 %v621_v43, %v1777_v51 }
 0x104   : > { %597 = vmatpush.msrb.mxu1 %v388_v3  ;;  %v661_v55 = vsub.f32 %v1766_v39, %v660_v47  ;;  %v667_v57 = vsub.f32 %v612_v42, %v1775_v50  ;;  %v692_v3 = vand.u32 4294901760, %v1790_v58 }
 0x105   : > { %599 = vmatmul.f32.vlgmr.msrb.gmra.mxu1 %v1699_v41  ;;  %v1769_v41 = vsub.f32 %v618_v26, %v1751_v32 }
 0x106   : > { %v662_v62 = vand.u32 4294901760, %v661_v55  ;;  %v668_v2 = vand.u32 4294901760, %v667_v57  ;;  %v693_v10 = vsub.f32 %v1790_v58, %v692_v3 }
 0x107   : > { %v684_v49 = vand.u32 4294901760, %v1769_v41 }
 0x108   : > { %v669_v9 = vsub.f32 %v667_v57, %v668_v2  ;;  %v694_v0 = vand.u32 4294901760, %v693_v10 }
 0x109   : > { %v685_v56 = vsub.f32 %v1769_v41, %v684_v49 }
 0x10a   : > { %v670_v63 = vand.u32 4294901760, %v669_v9 }
 0x10b   : > { %v686_v1 = vand.u32 4294901760, %v685_v56 }
 0x16a   : > { %v396_v12 = vpop.f32.mrf.mxu0 }
 0x172   : > { %v457_v14 = vpop.f32.mrf.mxu1  ;;  %v495_v16 = vpop.f32.mrf.mxu2 }
 0x173   : > { %v458_v15 = vadd.f32 %v457_v14, %v396_v12  ;;  %v526_v22 = vpop.f32.mrf.mxu3  ;;  %v701_v12 = vsub.f32 %v699_v11, %v700_v4  ;;  %v707_v14 = vsub.f32 %v627_v13, %v706_v8 }
 0x175   : > { %v496_v20 = vadd.f32 %v495_v16, %v458_v15  ;;  %v702_v15 = vand.u32 4294901760, %v701_v12  ;;  %v708_v16 = vand.u32 4294901760, %v707_v14 }
 0x177   : > { %v527_v27 = vadd.f32 %v526_v22, %v496_v20  ;;  %v709_v19 = vsub.f32 %v707_v14, %v708_v16 }
 0x179   : > { %v710_v20 = vand.u32 4294901760, %v709_v19 }
 0x17a   : > { %v571_v28 = vpop.f32.mrf.mxu0 }
 0x17b   : > { %v572_v33 = vadd.f32 %v571_v28, %v527_v27 }
 0x182   : > { %v600_v36 = vpop.f32.mrf.mxu1 }
 0x183   : > { %v601_v40 = vadd.f32 %v600_v36, %v572_v33 }
 0x185   : > { %v603_v44 = vmax.f32 %v601_v40, 0.0 }
 0x187   : > { %v631_v48 = vsel %vm629_vm3, %v603_v44, 0 }
 0x188   : > { %v648_v52 = vand.u32 4294901760, %v631_v48 }
 0x18a   : > { %v731_v54 = vsub.f32 %v631_v48, %v648_v52  ;;  %649 = vmatpush.msra.mxu0 %v648_v52  ;;  %1300 = vmatpush.msrb.mxu2 %v648_v52 }
 0x18b   : > { %655 = vmatmul.f32.vlgmr.msra.gmra.mxu0 %v654_v45  ;;  %679 = vmatmul.f32.vlgmr.msrb.gmra.mxu2 %v678_v46 }
 0x18c   : > { %786 = vmatpush.msrb.mxu0 %v731_v54  ;;  %v732_v59 = vand.u32 4294901760, %v731_v54 }
 0x18e   : > { %912 = vmatpush.msra.mxu2 %v732_v59  ;;  %v733_v61 = vsub.f32 %v731_v54, %v732_v59 }
 0x190   : > { %v734_v6 = vand.u32 4294901760, %v733_v61 }
 0x192   : > { %735 = vmatpush.msra.mxu1 %v734_v6  ;;  %1301 = vmatpush.msrb.mxu3 %v734_v6 }
 0x193   : > { %663 = vmatmul.f32.gmra.mxu0 %v662_v62  ;;  %687 = vmatmul.f32.gmra.mxu2 %v686_v1 }
 0x194   : > { %737 = vmatmul.f32.vlgmr.msra.gmra.mxu1 %v1729_v17  ;;  %749 = vmatmul.f32.vlgmr.msrb.gmra.mxu3 %v1731_v18 }
 0x195   : > { %844 = vmatpush.msrb.mxu1 %v648_v52  ;;  %962 = vmatpush.msra.mxu3 %v648_v52 }
 0x19b   : > { %671 = vmatmul.f32.gmra.mxu0 %v670_v63  ;;  %695 = vmatmul.f32.gmra.mxu2 %v694_v0 }
 0x19c   : > { %741 = vmatmul.f32.gmra.mxu1 %v1749_v31  ;;  %753 = vmatmul.f32.gmra.mxu3 %v1751_v32 }
 0x1a3   : > { %703 = vmatmul.f32.gmra.mxu2 %v702_v15  ;;  %789 = vmatmul.f32.vlgmr.msrb.gmra.mxu0 %v1740_v23 }
 0x1a4   : > { %745 = vmatmul.f32.gmra.mxu1 %v1775_v50  ;;  %757 = vmatmul.f32.gmra.mxu3 %v1777_v51 }
 0x1ab   : > { %711 = vmatmul.f32.gmra.mxu2 %v710_v20  ;;  %794 = vmatmul.f32.gmra.mxu0 %v1766_v39 }
 0x1ac   : > { %761 = vmatmul.f32.gmra.mxu3 %v1794_v5  ;;  %848 = vmatmul.f32.vlgmr.msrb.gmra.mxu1 %v652_v29 }
 0x1b3   : > { %799 = vmatmul.f32.gmra.mxu0 %v667_v57  ;;  %914 = vmatmul.f32.vlgmr.msra.gmra.mxu2 %v1729_v17 }
 0x1b4   : > { %765 = vmatmul.f32.gmra.mxu3 %v706_v8  ;;  %854 = vmatmul.f32.gmra.mxu1 %v660_v47 }
 0x1bb   : > { %804 = vmatmul.f32.gmra.mxu0 %v1743_v24  ;;  %918 = vmatmul.f32.gmra.mxu2 %v1749_v31 }
 0x1bc   : > { %860 = vmatmul.f32.gmra.mxu1 %v668_v2  ;;  %964 = vmatmul.f32.vlgmr.msra.gmra.mxu3 %v1729_v17 }
 0x1c3   : > { %809 = vmatmul.f32.gmra.mxu0 %v1769_v41  ;;  %922 = vmatmul.f32.gmra.mxu2 %v1775_v50 }
 0x1c4   : > { %866 = vmatmul.f32.gmra.mxu1 %v676_v30  ;;  %968 = vmatmul.f32.gmra.mxu3 %v1749_v31 }
 0x1cb   : > { %814 = vmatmul.f32.gmra.mxu0 %v1790_v58  ;;  %926 = vmatmul.f32.gmra.mxu2 %v1731_v18 }
 0x1cc   : > { %872 = vmatmul.f32.gmra.mxu1 %v684_v49  ;;  %972 = vmatmul.f32.gmra.mxu3 %v1775_v50 }
 0x1d3   : > { %819 = vmatmul.f32.gmra.mxu0 %v699_v11  ;;  %930 = vmatmul.f32.gmra.mxu2 %v1751_v32 }
 0x1d4   : > { %878 = vmatmul.f32.gmra.mxu1 %v692_v3  ;;  %976 = vmatmul.f32.gmra.mxu3 %v1731_v18 }
 0x1db   : > { %824 = vmatmul.f32.gmra.mxu0 %v707_v14  ;;  %934 = vmatmul.f32.gmra.mxu2 %v1777_v51 }
 0x1dc   : > { %884 = vmatmul.f32.gmra.mxu1 %v700_v4  ;;  %980 = vmatmul.f32.gmra.mxu3 %v1751_v32 }
 0x1e3   : > { %938 = vmatmul.f32.gmra.mxu2 %v1794_v5 }
 0x1e4   : > { %890 = vmatmul.f32.gmra.mxu1 %v708_v16  ;;  %984 = vmatmul.f32.gmra.mxu3 %v1777_v51 }
 0x1eb   : > { %942 = vmatmul.f32.gmra.mxu2 %v706_v8 }
 0x1ec   : > { %988 = vmatmul.f32.gmra.mxu3 %v1794_v5 }
 0x1f4   : > { %992 = vmatmul.f32.gmra.mxu3 %v706_v8 }
 0x208   : > { %v656_v17 = vpop.f32.mrf.mxu0 }
 0x20e   : > { %v680_v21 = vpop.f32.mrf.mxu2 }
 0x210   : > { %v664_v23 = vpop.f32.mrf.mxu0 }
 0x211   : > { %v738_v22 = vpop.f32.mrf.mxu1 }
 0x212   : > { %v739_v38 = vadd.f32 %v738_v22, %v656_v17 }
 0x216   : > { %v688_v18 = vpop.f32.mrf.mxu2 }
 0x217   : > { %v750_v24 = vpop.f32.mrf.mxu3 }
 0x218   : > { %v672_v27 = vpop.f32.mrf.mxu0  ;;  %v751_v2 = vadd.f32 %v750_v24, %v680_v21 }
 0x219   : > { %v742_v25 = vpop.f32.mrf.mxu1 }
 0x21a   : > { %v743_v44 = vadd.f32 %v742_v25, %v664_v23 }
 0x21e   : > { %v696_v26 = vpop.f32.mrf.mxu2 }
 0x21f   : > { %v754_v28 = vpop.f32.mrf.mxu3 }
 0x220   : > { %v790_v32 = vpop.f32.mrf.mxu0  ;;  %v755_v63 = vadd.f32 %v754_v28, %v688_v18 }
 0x221   : > { %v746_v29 = vpop.f32.mrf.mxu1  ;;  %v791_v41 = vadd.f32 %v790_v32, %v739_v38 }
 0x222   : > { %v747_v52 = vadd.f32 %v746_v29, %v672_v27 }
 0x226   : > { %v1836_v30 = vpop.f32.mrf.mxu2 }
 0x227   : > { %v758_v31 = vpop.f32.mrf.mxu3 }
 0x228   : > { %v795_v36 = vpop.f32.mrf.mxu0  ;;  %v759_v20 = vadd.f32 %v758_v31, %v696_v26 }
 0x229   : > { %v849_v33 = vpop.f32.mrf.mxu1  ;;  %v796_v50 = vadd.f32 %v795_v36, %v743_v44 }
 0x22a   : > { %v850_v42 = vadd.f32 %v849_v33, %v791_v41 }
 0x22e   : > { %v1838_v34 = vpop.f32.mrf.mxu2 }
 0x22f   : > { %v762_v35 = vpop.f32.mrf.mxu3 }
 0x230   : > { %v800_v43 = vpop.f32.mrf.mxu0  ;;  %v763_v27 = vadd.f32 %v762_v35, %v1836_v30 }
 0x231   : > { %v855_v37 = vpop.f32.mrf.mxu1  ;;  %v801_v59 = vadd.f32 %v800_v43, %v747_v52 }
 0x232   : > { %v856_v51 = vadd.f32 %v855_v37, %v796_v50 }
 0x236   : > { %v915_v39 = vpop.f32.mrf.mxu2 }
 0x237   : > { %v1840_v40 = vpop.f32.mrf.mxu3  ;;  %v916_v45 = vadd.f32 %v915_v39, %v850_v42 }
 0x238   : > { %v805_v55 = vpop.f32.mrf.mxu0  ;;  %v767_v37 = vadd.f32 %v1840_v40, %v1838_v34 }
 0x239   : > { %v861_v47 = vpop.f32.mrf.mxu1  ;;  %v806_v6 = vadd.f32 %v805_v55, %v751_v2 }
 0x23a   : > { %v862_v60 = vadd.f32 %v861_v47, %v801_v59 }
 0x23e   : > { %v919_v46 = vpop.f32.mrf.mxu2 }
 0x23f   : > { %v965_v48 = vpop.f32.mrf.mxu3  ;;  %v920_v53 = vadd.f32 %v919_v46, %v856_v51 }
 0x240   : > { %v1842_v49 = vadd.f32 %v965_v48, %v916_v45  ;;  %v810_v5 = vpop.f32.mrf.mxu0 }
 0x241   : > { %v867_v58 = vpop.f32.mrf.mxu1  ;;  %v811_v4 = vadd.f32 %v810_v5, %v755_v63 }
 0x242   : > { %1004 = vrot.lane.b32.xlu1 %v1842_v49, %s1514_s15  ;;  %v868_v9 = vadd.f32 %v867_v58, %v806_v6 }
 0x246   : > { %v923_v54 = vpop.f32.mrf.mxu2 }
 0x247   : > { %v969_v56 = vpop.f32.mrf.mxu3  ;;  %v924_v61 = vadd.f32 %v923_v54, %v862_v60 }
 0x248   : > { %v970_v57 = vadd.f32 %v969_v56, %v920_v53  ;;  %v815_v8 = vpop.f32.mrf.mxu0 }
 0x249   : > { %v873_v7 = vpop.f32.mrf.mxu1  ;;  %v816_v21 = vadd.f32 %v815_v8, %v759_v20 }
 0x24a   : > { %1006 = vrot.lane.b32.xlu2 %v970_v57, %s1514_s15  ;;  %v874_v12 = vadd.f32 %v873_v7, %v811_v4 }
 0x24e   : > { %v927_v62 = vpop.f32.mrf.mxu2 }
 0x24f   : > { %v973_v1 = vpop.f32.mrf.mxu3  ;;  %v928_v10 = vadd.f32 %v927_v62, %v868_v9 }
 0x250   : > { %v1847_v3 = vadd.f32 %v973_v1, %v924_v61  ;;  %v820_v23 = vpop.f32.mrf.mxu0 }
 0x251   : > { %v879_v14 = vpop.f32.mrf.mxu1  ;;  %v821_v32 = vadd.f32 %v820_v23, %v763_v27 }
 0x252   : > { %1008 = vrot.lane.b32.xlu0 %v1847_v3, %s1514_s15  ;;  %v880_v22 = vadd.f32 %v879_v14, %v816_v21 }
 0x256   : > { %v931_v11 = vpop.f32.mrf.mxu2 }
 0x257   : > { %v977_v13 = vpop.f32.mrf.mxu3  ;;  %v932_v15 = vadd.f32 %v931_v11, %v874_v12 }
 0x258   : > { %v978_v0 = vadd.f32 %v977_v13, %v928_v10  ;;  %v825_v33 = vpop.f32.mrf.mxu0 }
 0x259   : > { %v885_v24 = vpop.f32.mrf.mxu1  ;;  %v826_v41 = vadd.f32 %v825_v33, %v767_v37 }
 0x25a   : > { %1010 = vrot.lane.b32.xlu2 %v978_v0, %s1514_s15  ;;  %v886_v26 = vadd.f32 %v885_v24, %v821_v32 }
 0x25e   : > { %v935_v16 = vpop.f32.mrf.mxu2 }
 0x25f   : > { %v981_v19 = vpop.f32.mrf.mxu3  ;;  %v936_v18 = vadd.f32 %v935_v16, %v880_v22 }
 0x260   : > { %v1852_v17 = vadd.f32 %v981_v19, %v932_v15 }
 0x261   : > { %v891_v39 = vpop.f32.mrf.mxu1 }
 0x262   : > { %1012 = vrot.lane.b32.xlu1 %v1852_v17, %s1514_s15  ;;  %v892_v35 = vadd.f32 %v891_v39, %v826_v41 }
 0x266   : > { %v939_v29 = vpop.f32.mrf.mxu2 }
 0x267   : > { %v985_v25 = vpop.f32.mrf.mxu3  ;;  %v940_v31 = vadd.f32 %v939_v29, %v886_v26 }
 0x268   : > { %v1857_v28 = vadd.f32 %v985_v25, %v936_v18 }
 0x26a   : > { %1014 = vrot.lane.b32.xlu0 %v1857_v28, %s1514_s15 }
 0x26e   : > { %v943_v30 = vpop.f32.mrf.mxu2 }
 0x26f   : > { %v989_v36 = vpop.f32.mrf.mxu3  ;;  %v944_v42 = vadd.f32 %v943_v30, %v892_v35 }
 0x270   : > { %v990_v38 = vadd.f32 %v989_v36, %v940_v31 }
 0x272   : > { %1016 = vrot.lane.b32.xlu2 %v990_v38, %s1514_s15 }
 0x277   : > { %v993_v43 = vpop.f32.mrf.mxu3 }
 0x278   : > { %v1864_v44 = vadd.f32 %v993_v43, %v944_v42 }
 0x27a   : > { %1018 = vrot.lane.b32.xlu1 %v1864_v44, %s1514_s15 }
 0x2a4   : > { %v1007_v45 = vpop.permute.xlu2 %1006 }
 0x2a5   : > { %v1029_v46 = vadd.f32 %v1007_v45, %v970_v57 }
 0x2a7   : > { %v1290_v47 = vmul.f32 -1.442695, %v1029_v46 }
 0x2a9   : > { %1379 = vpow2.f32 %v1290_v47 }
 0x2af   : > { %v1380_v48 = vpop.eup %1379 }
 0x2b0   : > { %v1061_v34 = vadd.f32 1.0, %v1380_v48 }
 0x2b2   : > { %1381 = vrcp.f32 %v1061_v34  ;;  %v1094_v59 = vand.u32 2147483648, %v1061_v34  ;;  %v1092_v60 = vand.u32 2147483647, %v1061_v34  ;;  %vm1088_vm5 = vweird.f32 %v1061_v34 }
 0x2b4   : > { %v1011_v40 = vpop.permute.xlu2 %1010  ;;  %v1005_v50 = vpop.permute.xlu1 %1004  ;;  %v1095_v2 = vor.u32 1.1754944e-38, %v1094_v59  ;;  %vm1093_vm7 = vcmp.eq.f32.partialorder %v1092_v60, 8.507059e+37 }
 0x2b5   : > { %v1031_v51 = vadd.f32 %v1011_v40, %v978_v0  ;;  %v1028_v52 = vadd.f32 %v1005_v50, %v1842_v49 }
 0x2b7   : > { %v1292_v53 = vmul.f32 -1.442695, %v1031_v51  ;;  %v1289_v54 = vmul.f32 -1.442695, %v1028_v52 }
 0x2b8   : > { %v1382_v55 = vpop.eup %1381 }
 0x2b9   : > { %v1084_v56 = vmul.f32 %v1382_v55, %v1061_v34  ;;  %1383 = vpow2.f32 %v1292_v53  ;;  %vm1089_vm4 = vweird.f32 %v1382_v55 }
 0x2ba   : > { %1385 = vpow2.f32 %v1289_v54  ;;  %vm1090_vm6 = vmor %vm1088_vm5, %vm1089_vm4 }
 0x2bb   : > { %v1085_v58 = vsub.f32 1.0, %v1084_v56 }
 0x2bd   : > { %v1086_v57 = vmul.f32 %v1382_v55, %v1085_v58 }
 0x2bf   : > { %v1384_v61 = vpop.eup %1383  ;;  %v1087_v62 = vadd.f32 %v1382_v55, %v1086_v57 }
 0x2c0   : > { %v1386_v1 = vpop.eup %1385  ;;  %v1063_v5 = vadd.f32 1.0, %v1384_v61 }
 0x2c1   : > { %v1091_v49 = vsel %vm1090_vm6, %v1382_v55, %v1087_v62  ;;  %v1060_v6 = vadd.f32 1.0, %v1386_v1 }
 0x2c2   : > { %v1096_v7 = vsel %vm1093_vm7, %v1095_v2, %v1091_v49  ;;  %1387 = vrcp.f32 %v1063_v5  ;;  %v1122_v12 = vand.u32 2147483647, %v1063_v5  ;;  %v1124_v14 = vand.u32 2147483648, %v1063_v5 }
 0x2c3   : > { %1189 = vst.msk [vmem:[%s1626_s9 + $0x8] sm:$0xff] %vm344_vm0, %v1096_v7  ;;  %1389 = vrcp.f32 %v1060_v6  ;;  %v1079_v20 = vand.u32 2147483648, %v1060_v6  ;;  %v1077_v23 = vand.u32 2147483647, %v1060_v6  ;;  %vm1118_vm10 = vweird.f32 %v1063_v5 }
 0x2c4   : > { %v1009_v9 = vpop.permute.xlu0 %1008  ;;  %v1125_v25 = vor.u32 1.1754944e-38, %v1124_v14  ;;  %vm1073_vm12 = vweird.f32 %v1060_v6  ;;  %vm1123_vm13 = vcmp.eq.f32.partialorder %v1122_v12, 8.507059e+37 }
 0x2c5   : > { %v1030_v10 = vadd.f32 %v1009_v9, %v1847_v3  ;;  %v1080_v26 = vor.u32 1.1754944e-38, %v1079_v20  ;;  %vm1078_vm15 = vcmp.eq.f32.partialorder %v1077_v23, 8.507059e+37 }
 0x2c7   : > { %v1291_v11 = vmul.f32 -1.442695, %v1030_v10 }
 0x2c8   : > { %v1388_v13 = vpop.eup %1387 }
 0x2c9   : > { %v1390_v63 = vpop.eup %1389  ;;  %v1114_v0 = vmul.f32 %v1388_v13, %v1063_v5  ;;  %1391 = vpow2.f32 %v1291_v11  ;;  %vm1119_vm8 = vweird.f32 %v1388_v13 }
 0x2ca   : > { %v1069_v4 = vmul.f32 %v1390_v63, %v1060_v6  ;;  %vm1074_vm9 = vweird.f32 %v1390_v63  ;;  %vm1120_vm11 = vmor %vm1118_vm10, %vm1119_vm8 }
 0x2cb   : > { %v1115_v8 = vsub.f32 1.0, %v1114_v0  ;;  %vm1075_vm14 = vmor %vm1073_vm12, %vm1074_vm9 }
 0x2cc   : > { %v1070_v15 = vsub.f32 1.0, %v1069_v4  ;;  %v1017_v16 = vpop.permute.xlu2 %1016 }
 0x2cd   : > { %v1116_v19 = vmul.f32 %v1388_v13, %v1115_v8  ;;  %v1034_v21 = vadd.f32 %v1017_v16, %v990_v38 }
 0x2ce   : > { %v1071_v22 = vmul.f32 %v1390_v63, %v1070_v15 }
 0x2cf   : > { %v1392_v18 = vpop.eup %1391  ;;  %v1117_v3 = vadd.f32 %v1388_v13, %v1116_v19  ;;  %v1295_v24 = vmul.f32 -1.442695, %v1034_v21 }
 0x2d0   : > { %v1072_v27 = vadd.f32 %v1390_v63, %v1071_v22  ;;  %v1062_v29 = vadd.f32 1.0, %v1392_v18 }
 0x2d1   : > { %v1121_v32 = vsel %vm1120_vm11, %v1388_v13, %v1117_v3  ;;  %1393 = vpow2.f32 %v1295_v24 }
 0x2d2   : > { %v1126_v31 = vsel %vm1123_vm13, %v1125_v25, %v1121_v32  ;;  %v1076_v33 = vsel %vm1075_vm14, %v1390_v63, %v1072_v27  ;;  %1395 = vrcp.f32 %v1062_v29  ;;  %v1109_v45 = vand.u32 2147483648, %v1062_v29 }
 0x2d3   : > { %1191 = vst.msk [vmem:[%s1626_s9 + $0x18] sm:$0xff] %vm344_vm0, %v1126_v31  ;;  %v1081_v36 = vsel %vm1078_vm15, %v1080_v26, %v1076_v33  ;;  %v1107_v48 = vand.u32 2147483647, %v1062_v29  ;;  %vm1103_vm2 = vweird.f32 %v1062_v29 }
 0x2d4   : > { %1188 = vst.msk [vmem:[%s1626_s9] sm:$0xff] %vm344_vm0, %v1081_v36  ;;  %v1013_v37 = vpop.permute.xlu1 %1012  ;;  %v1110_v52 = vor.u32 1.1754944e-38, %v1109_v45 }
 0x2d5   : > { %v1032_v38 = vadd.f32 %v1013_v37, %v1852_v17  ;;  %vm1108_vm4 = vcmp.eq.f32.partialorder %v1107_v48, 8.507059e+37 }
 0x2d7   : > { %v1394_v39 = vpop.eup %1393  ;;  %v1293_v41 = vmul.f32 -1.442695, %v1032_v38 }
 0x2d8   : > { %v1396_v30 = vpop.eup %1395  ;;  %v1066_v35 = vadd.f32 1.0, %v1394_v39 }
 0x2d9   : > { %v1099_v42 = vmul.f32 %v1396_v30, %v1062_v29  ;;  %1397 = vpow2.f32 %v1293_v41  ;;  %vm1104_vm1 = vweird.f32 %v1396_v30 }
 0x2da   : > { %1399 = vrcp.f32 %v1066_v35  ;;  %vm1105_vm3 = vmor %vm1103_vm2, %vm1104_vm1  ;;  %v1169_v59 = vand.u32 2147483648, %v1066_v35  ;;  %v1167_v57 = vand.u32 2147483647, %v1066_v35  ;;  %vm1163_vm6 = vweird.f32 %v1066_v35 }
 0x2db   : > { %v1100_v43 = vsub.f32 1.0, %v1099_v42 }
 0x2dc   : > { %v1015_v46 = vpop.permute.xlu0 %1014  ;;  %v1170_v1 = vor.u32 1.1754944e-38, %v1169_v59  ;;  %vm1168_vm8 = vcmp.eq.f32.partialorder %v1167_v57, 8.507059e+37 }
 0x2dd   : > { %v1101_v47 = vmul.f32 %v1396_v30, %v1100_v43  ;;  %v1033_v34 = vadd.f32 %v1015_v46, %v1857_v28 }
 0x2df   : > { %v1398_v40 = vpop.eup %1397  ;;  %v1102_v50 = vadd.f32 %v1396_v30, %v1101_v47  ;;  %v1294_v17 = vmul.f32 -1.442695, %v1033_v34 }
 0x2e0   : > { %v1400_v51 = vpop.eup %1399  ;;  %v1064_v53 = vadd.f32 1.0, %v1398_v40 }
 0x2e1   : > { %v1106_v54 = vsel %vm1105_vm3, %v1396_v30, %v1102_v50  ;;  %v1159_v55 = vmul.f32 %v1400_v51, %v1066_v35  ;;  %1401 = vpow2.f32 %v1294_v17  ;;  %vm1164_vm5 = vweird.f32 %v1400_v51 }
 0x2e2   : > { %v1111_v56 = vsel %vm1108_vm4, %v1110_v52, %v1106_v54  ;;  %1403 = vrcp.f32 %v1064_v53  ;;  %vm1165_vm7 = vmor %vm1163_vm6, %vm1164_vm5  ;;  %v1139_v9 = vand.u32 2147483648, %v1064_v53  ;;  %v1137_v13 = vand.u32 2147483647, %v1064_v53 }
 0x2e3   : > { %1190 = vst.msk [vmem:[%s1626_s9 + $0x10] sm:$0xff] %vm344_vm0, %v1111_v56  ;;  %v1160_v58 = vsub.f32 1.0, %v1159_v55  ;;  %vm1133_vm10 = vweird.f32 %v1064_v53 }
 0x2e4   : > { %v1140_v12 = vor.u32 1.1754944e-38, %v1139_v9  ;;  %vm1138_vm12 = vcmp.eq.f32.partialorder %v1137_v13, 8.507059e+37 }
 0x2e5   : > { %v1161_v28 = vmul.f32 %v1400_v51, %v1160_v58 }
 0x2e7   : > { %v1402_v60 = vpop.eup %1401  ;;  %v1162_v61 = vadd.f32 %v1400_v51, %v1161_v28 }
 0x2e8   : > { %v1404_v62 = vpop.eup %1403  ;;  %v1065_v2 = vadd.f32 1.0, %v1402_v60 }
 0x2e9   : > { %v1166_v5 = vsel %vm1165_vm7, %v1400_v51, %v1162_v61  ;;  %v1129_v49 = vmul.f32 %v1404_v62, %v1064_v53  ;;  %vm1134_vm9 = vweird.f32 %v1404_v62 }
 0x2ea   : > { %v1171_v6 = vsel %vm1168_vm8, %v1170_v1, %v1166_v5  ;;  %1405 = vrcp.f32 %v1065_v2  ;;  %vm1135_vm11 = vmor %vm1133_vm10, %vm1134_vm9  ;;  %v1154_v20 = vand.u32 2147483648, %v1065_v2  ;;  %v1152_v22 = vand.u32 2147483647, %v1065_v2 }
 0x2eb   : > { %1194 = vst.msk [vmem:[%s1626_s9 + $0x30] sm:$0xff] %vm344_vm0, %v1171_v6  ;;  %v1130_v7 = vsub.f32 1.0, %v1129_v49  ;;  %vm1148_vm14 = vweird.f32 %v1065_v2 }
 0x2ec   : > { %v1019_v10 = vpop.permute.xlu1 %1018  ;;  %v1155_v18 = vor.u32 1.1754944e-38, %v1154_v20  ;;  %vm1153_vm1 = vcmp.eq.f32.partialorder %v1152_v22, 8.507059e+37 }
 0x2ed   : > { %v1131_v11 = vmul.f32 %v1404_v62, %v1130_v7  ;;  %v1035_v63 = vadd.f32 %v1019_v10, %v1864_v44 }
 0x2ef   : > { %v1132_v0 = vadd.f32 %v1404_v62, %v1131_v11  ;;  %v1296_v4 = vmul.f32 -1.442695, %v1035_v63 }
 0x2f0   : > { %v1406_v8 = vpop.eup %1405 }
 0x2f1   : > { %v1136_v14 = vsel %vm1135_vm11, %v1404_v62, %v1132_v0  ;;  %v1144_v15 = vmul.f32 %v1406_v8, %v1065_v2  ;;  %1407 = vpow2.f32 %v1296_v4  ;;  %vm1149_vm13 = vweird.f32 %v1406_v8 }
 0x2f2   : > { %v1141_v16 = vsel %vm1138_vm12, %v1140_v12, %v1136_v14  ;;  %vm1150_vm15 = vmor %vm1148_vm14, %vm1149_vm13 }
 0x2f3   : > { %1192 = vst.msk [vmem:[%s1626_s9 + $0x20] sm:$0xff] %vm344_vm0, %v1141_v16  ;;  %v1145_v19 = vsub.f32 1.0, %v1144_v15 }
 0x2f5   : > { %v1146_v21 = vmul.f32 %v1406_v8, %v1145_v19 }
 0x2f7   : > { %v1408_v44 = vpop.eup %1407  ;;  %v1147_v23 = vadd.f32 %v1406_v8, %v1146_v21 }
 0x2f8   : > { %v1067_v3 = vadd.f32 1.0, %v1408_v44 }
 0x2f9   : > { %v1151_v24 = vsel %vm1150_vm15, %v1406_v8, %v1147_v23 }
 0x2fa   : > { %v1156_v25 = vsel %vm1153_vm1, %v1155_v18, %v1151_v24  ;;  %1409 = vrcp.f32 %v1067_v3  ;;  %v1184_v26 = vand.u32 2147483648, %v1067_v3  ;;  %v1182_v33 = vand.u32 2147483647, %v1067_v3 }
 0x2fb   : > { %1193 = vst.msk [vmem:[%s1626_s9 + $0x28] sm:$0xff] %vm344_vm0, %v1156_v25  ;;  %vm1178_vm3 = vweird.f32 %v1067_v3 }
 0x2fc   : > { %v1185_v37 = vor.u32 1.1754944e-38, %v1184_v26  ;;  %vm1183_vm5 = vcmp.eq.f32.partialorder %v1182_v33, 8.507059e+37 }
 0x300   : > { %v1410_v27 = vpop.eup %1409 }
 0x301   : > { %v1174_v29 = vmul.f32 %v1410_v27, %v1067_v3  ;;  %vm1179_vm2 = vweird.f32 %v1410_v27 }
 0x302   : > { %vm1180_vm4 = vmor %vm1178_vm3, %vm1179_vm2 }
 0x303   : > { %v1175_v32 = vsub.f32 1.0, %v1174_v29 }
 0x305   : > { %v1176_v31 = vmul.f32 %v1410_v27, %v1175_v32 }
 0x307   : > { %v1177_v36 = vadd.f32 %v1410_v27, %v1176_v31 }
 0x309   : > { %v1181_v38 = vsel %vm1180_vm4, %v1410_v27, %v1177_v36 }
 0x30a   : > { %v1186_v39 = vsel %vm1183_vm5, %v1185_v37, %v1181_v38 }
 0x30b   : > { %1195 = vst.msk [vmem:[%s1626_s9 + $0x38] sm:$0xff] %vm344_vm0, %v1186_v39 }
 0x30c PF: > { %s16_s19 = sadd.s32 1, %s1507_s19   ;;  %s1919_s12 = smov %s1483_s13 }
 0x30d   : > { %p13_p3 = scmp.ge.s32.totalorder %s16_s19, 6   ;;  %s1920_s13 = smov %s1487_s14 }
 0x30e   : > { %s1921_s14 = smov %s1602_s5  ;;  %s1922_s15 = smov %s1499_s17 }
 0x30f   : > { %s1923_s16 = smov %s1503_s18  ;;  %s1924_s17 = smov %s1927_s21 }
 0x310   : > { %s1925_s18 = smov %s1931_s22  ;;  %15 = sbr.rel (!%p13_p3) target bundleno = 5 (0x5), region = 80 }
 0x315   :  { %1217 = vsyncpa [#allocation5], 1 }
 0x316   :  { %1219 = vsyncpa [#allocation5 + $0x1], 1 }

</bundles_post_ra>
